<compile_context>
chip_gen: v7x
topology: tpu7x:2x2x1
jax: 0.10.0
libtpu: 0.0.40
codegen_flags: <defaults>
</compile_context>

<pallas_src>
import jax
import jax.numpy as jnp
from jax.experimental import pallas as pl
from jax.experimental.pallas import tpu as pltpu

EPS = 1e-5
LANE = 128
SUBLANE = 8


def _round_up(v, m):
    return (v + m - 1) // m * m


def _bn_stats_kernel(x_ref, sum_ref, sumsq_ref):
    """Pass 1: accumulate per-channel sum / sum-of-squares over row tiles."""
    @pl.when(pl.program_id(0) == 0)
    def _():
        sum_ref[...] = jnp.zeros_like(sum_ref)
        sumsq_ref[...] = jnp.zeros_like(sumsq_ref)

    x = x_ref[...].astype(jnp.float32)
    sum_ref[...] += jnp.sum(x, axis=0, keepdims=True)
    sumsq_ref[...] += jnp.sum(x * x, axis=0, keepdims=True)


def _bn_apply_kernel(x_ref, scale_ref, bias_ref, o_ref):
    """Pass 2: y = x * scale + bias with precomputed per-channel scale/bias."""
    x = x_ref[...].astype(jnp.float32)
    o_ref[...] = (x * scale_ref[...] + bias_ref[...]).astype(o_ref.dtype)


def batch_norm_overtime(x, gamma, beta, *, eps=EPS):
    """x: (seq_len, batch, hidden). BatchNorm1d (training mode) over (batch, seq)."""
    T, B, H = x.shape
    N = T * B

    Hp = _round_up(H, LANE)
    # Row-tile size: big enough to amortize per-step overhead, small enough
    # that double-buffered in+out blocks stay well under the scoped VMEM limit.
    bytes_per_row = Hp * 4
    rows_by_vmem = max(SUBLANE, ((4 * 1024 * 1024) // bytes_per_row) // SUBLANE * SUBLANE)
    tile_rows = min(512, _round_up(N, SUBLANE), rows_by_vmem)
    Np = _round_up(N, tile_rows)
    num_tiles = Np // tile_rows

    # Zero-padded slab: zero rows/cols don't perturb sum/sumsq (divisor uses
    # the true N), and padded outputs are sliced away below.
    x2d = jnp.pad(x.reshape(N, H), ((0, Np - N), (0, Hp - H)))

    # ---- Pass 1: global per-channel statistics (accumulator over 'arbitrary' axis).
    sum_, sumsq = pl.pallas_call(
        _bn_stats_kernel,
        out_shape=(
            jax.ShapeDtypeStruct((1, Hp), jnp.float32),
            jax.ShapeDtypeStruct((1, Hp), jnp.float32),
        ),
        grid=(num_tiles,),
        in_specs=[pl.BlockSpec((tile_rows, Hp), lambda i: (i, 0))],
        out_specs=(
            pl.BlockSpec((1, Hp), lambda i: (0, 0)),
            pl.BlockSpec((1, Hp), lambda i: (0, 0)),
        ),
        compiler_params=pltpu.CompilerParams(
            dimension_semantics=("arbitrary",),
        ),
    )(x2d)

    # Fold mean/var/gamma/beta into one multiply-add per element (tiny (1, Hp) work).
    inv_n = 1.0 / float(N)
    mean = sum_ * inv_n
    var = jnp.maximum(sumsq * inv_n - mean * mean, 0.0)  # biased variance, fp32 accum
    gamma_p = jnp.pad(gamma.astype(jnp.float32).reshape(1, H), ((0, 0), (0, Hp - H)))
    beta_p = jnp.pad(beta.astype(jnp.float32).reshape(1, H), ((0, 0), (0, Hp - H)))
    scale = gamma_p * jax.lax.rsqrt(var + eps)
    bias = beta_p - mean * scale

    # ---- Pass 2: streaming apply; disjoint row tiles -> 'parallel' (megacore on v7x).
    out2d = pl.pallas_call(
        _bn_apply_kernel,
        out_shape=jax.ShapeDtypeStruct((Np, Hp), x.dtype),
        grid=(num_tiles,),
        in_specs=[
            pl.BlockSpec((tile_rows, Hp), lambda i: (i, 0)),
            pl.BlockSpec((1, Hp), lambda i: (0, 0)),
            pl.BlockSpec((1, Hp), lambda i: (0, 0)),
        ],
        out_specs=pl.BlockSpec((tile_rows, Hp), lambda i: (i, 0)),
        compiler_params=pltpu.CompilerParams(
            dimension_semantics=("parallel",),
        ),
    )(x2d, scale, bias)

    return out2d[:N, :H].reshape(T, B, H)


def _reference(x, gamma, beta, eps=EPS):
    # Pure-JAX reference mirroring nn.BatchNorm1d (training mode) semantics.
    xf = x.astype(jnp.float32)
    mean = jnp.mean(xf, axis=(0, 1), keepdims=True)  # per hidden channel
    var = jnp.mean((xf - mean) ** 2, axis=(0, 1), keepdims=True)
    y = (xf - mean) * jax.lax.rsqrt(var + eps) * gamma + beta
    return y.astype(x.dtype)


if __name__ == "__main__":
    seq_len, batch, hidden = 8, 4, 32

    key = jax.random.PRNGKey(0)
    kx, kg, kb = jax.random.split(key, 3)
    x = jax.random.normal(kx, (seq_len, batch, hidden), dtype=jnp.float32)

    # Deterministic non-trivial BatchNorm1d(hidden) parameters.
    gamma = 1.0 + 0.1 * jax.random.normal(kg, (hidden,), dtype=jnp.float32)
    beta = 0.1 * jax.random.normal(kb, (hidden,), dtype=jnp.float32)

    out = batch_norm_overtime(x, gamma, beta)
    out = jax.block_until_ready(out)

    ref = _reference(x, gamma, beta)
    assert out.shape == (seq_len, batch, hidden)
    assert out.dtype == x.dtype
    assert jnp.allclose(out, ref, atol=1e-4, rtol=1e-4), "mismatch vs reference"

    print("KERNEL_OK")
</pallas_src>

<mosaic_0001>
module attributes {stable_mosaic.version = 11 : i64} {
  func.func @_bn_stats_kernel(%arg0: i32, %arg1: memref<32x128xf32, #tpu.memory_space<vmem>>, %arg2: memref<1x128xf32, #tpu.memory_space<vmem>>, %arg3: memref<1x128xf32, #tpu.memory_space<vmem>>) attributes {dimension_semantics = [#tpu.dimension_semantics<arbitrary>], iteration_bounds = array<i64: 1>, scalar_prefetch = 0 : i64, scratch_operands = 0 : i64, tpu.core_type = #tpu.core_type<tc>, window_params = [{transform_indices = @transform_0, window_bounds = array<i64: 32, 128>}, {pipeline_mode = #tpu.pipeline_mode<synchronous>, transform_indices = @transform_1, window_bounds = array<i64: 1, 128>}, {pipeline_mode = #tpu.pipeline_mode<synchronous>, transform_indices = @transform_2, window_bounds = array<i64: 1, 128>}]} {
    %c0_i32 = arith.constant 0 : i32
    %0 = arith.cmpi eq, %arg0, %c0_i32 : i32
    %1 = arith.extui %0 : i1 to i32
    %c0_i32_0 = arith.constant 0 : i32
    %2 = arith.cmpi ne, %1, %c0_i32_0 : i32
    scf.if %2 {
      %cst_11 = arith.constant 0.000000e+00 : f32
      %15 = vector.broadcast %cst_11 : f32 to vector<1x128xf32>
      %c0_12 = arith.constant 0 : index
      %c0_13 = arith.constant 0 : index
      %16 = vector.load %arg2[%c0_12, %c0_13] : memref<1x128xf32, #tpu.memory_space<vmem>>, vector<1x128xf32>
      tpu.vector_store %arg2[%c0_12, %c0_13], %15 {strides = array<i32>} : memref<1x128xf32, #tpu.memory_space<vmem>>, vector<1x128xf32>,
      %cst_14 = arith.constant 0.000000e+00 : f32
      %17 = vector.broadcast %cst_14 : f32 to vector<1x128xf32>
      %c0_15 = arith.constant 0 : index
      %c0_16 = arith.constant 0 : index
      %18 = vector.load %arg3[%c0_15, %c0_16] : memref<1x128xf32, #tpu.memory_space<vmem>>, vector<1x128xf32>
      tpu.vector_store %arg3[%c0_15, %c0_16], %17 {strides = array<i32>} : memref<1x128xf32, #tpu.memory_space<vmem>>, vector<1x128xf32>,
    } else {
    }
    %c0 = arith.constant 0 : index
    %c0_1 = arith.constant 0 : index
    %3 = vector.load %arg1[%c0, %c0_1] : memref<32x128xf32, #tpu.memory_space<vmem>>, vector<32x128xf32>
    %c0_2 = arith.constant 0 : index
    %c0_3 = arith.constant 0 : index
    %4 = vector.load %arg2[%c0_2, %c0_3] : memref<1x128xf32, #tpu.memory_space<vmem>>, vector<1x128xf32>
    %cst = arith.constant dense<0.000000e+00> : vector<128xf32>
    %5 = vector.multi_reduction <add>, %3, %cst [0] : vector<32x128xf32> to vector<128xf32>
    %6 = vector.shape_cast %5 : vector<128xf32> to vector<1x128xf32>
    %7 = arith.addf %4, %6 : vector<1x128xf32>
    %c0_4 = arith.constant 0 : index
    %c0_5 = arith.constant 0 : index
    %8 = vector.load %arg2[%c0_4, %c0_5] : memref<1x128xf32, #tpu.memory_space<vmem>>, vector<1x128xf32>
    tpu.vector_store %arg2[%c0_4, %c0_5], %7 {strides = array<i32>} : memref<1x128xf32, #tpu.memory_space<vmem>>, vector<1x128xf32>,
    %c0_6 = arith.constant 0 : index
    %c0_7 = arith.constant 0 : index
    %9 = vector.load %arg3[%c0_6, %c0_7] : memref<1x128xf32, #tpu.memory_space<vmem>>, vector<1x128xf32>
    %10 = arith.mulf %3, %3 : vector<32x128xf32>
    %cst_8 = arith.constant dense<0.000000e+00> : vector<128xf32>
    %11 = vector.multi_reduction <add>, %10, %cst_8 [0] : vector<32x128xf32> to vector<128xf32>
    %12 = vector.shape_cast %11 : vector<128xf32> to vector<1x128xf32>
    %13 = arith.addf %9, %12 : vector<1x128xf32>
    %c0_9 = arith.constant 0 : index
    %c0_10 = arith.constant 0 : index
    %14 = vector.load %arg3[%c0_9, %c0_10] : memref<1x128xf32, #tpu.memory_space<vmem>>, vector<1x128xf32>
    tpu.vector_store %arg3[%c0_9, %c0_10], %13 {strides = array<i32>} : memref<1x128xf32, #tpu.memory_space<vmem>>, vector<1x128xf32>,
    return
  }
  func.func @transform_0(%arg0: i32) -> (i32, i32) {
    %c0_i32 = arith.constant 0 : i32
    %c0_i32_0 = arith.constant 0 : i32
    return %arg0, %c0_i32 : i32, i32
  }
  func.func @transform_1(%arg0: i32) -> (i32, i32) {
    %c0_i32 = arith.constant 0 : i32
    %c0_i32_0 = arith.constant 0 : i32
    %c0_i32_1 = arith.constant 0 : i32
    return %c0_i32, %c0_i32_0 : i32, i32
  }
  func.func @transform_2(%arg0: i32) -> (i32, i32) {
    %c0_i32 = arith.constant 0 : i32
    %c0_i32_0 = arith.constant 0 : i32
    %c0_i32_1 = arith.constant 0 : i32
    return %c0_i32, %c0_i32_0 : i32, i32
  }
}

</mosaic_0001>

<bundles_post_ra>
// kernel: tpu_custom_call.1
= control target key start
LH: loop header
LB: loop body
LE: loop exit
PB: predicated region body
PF: predicated region fallthrough
CT: control target
= control target key end

     0   :  { %8 = vsyncpa [#allocation3], 0  ;;  %s236_s0 = inlined_call_operand.hbm [shape: f32[32,128], index: 0, kind: input, shape index: {}]   ;;  %s237_s1 = inlined_call_operand.hbm [shape: f32[1,128], index: 1, kind: output, shape index: {0}]   ;;  %s238_s2 = inlined_call_operand.hbm [shape: f32[1,128], index: 2, kind: output, shape index: {1}]  }
   0x1   :  { %9 = vsyncpa [#allocation4], 0 }
   0x2   :  { %10 = vsyncpa [#allocation7], 0  ;;  %s171_s9 = smov [#allocation2]   ;;  %s99_s13 = scalar_lea.hbm %s236_s0, 512 }
   0x3   :  { %s16_s10 = sshll.u32 %s171_s9, 4  ;;  %p100_p0 = scmp.ne.s32.totalorder %s236_s0, %s99_s13  ;;  %s17_s10 = int_to_ptr.vmem [resolvable:$true] %s16_s10 }
   0x4   :  { %p103_p1 = scmp.lt.u32.totalorder %s99_s13, %s236_s0 }
   0x6   :  { %p105_p2 = pnand %p103_p1, %p100_p0 }
   0x8   :  { %108 = shalt.err (!%p105_p2)
}
   0x9   :  { %s109_s18 = scalar_lea.vmem %s17_s10, 512  ;;  %p114_p4 = scmp.lt.s32.totalorder %s17_s10, %s17_s10 }
   0xa   :  { %p110_p3 = scmp.ne.s32.totalorder %s17_s10, %s109_s18  ;;  %p115_p5 = scmp.lt.s32.totalorder %s109_s18, %s109_s18 }
   0xc   :  { %p116_p6 = por %p115_p5, %p114_p4 }
   0xe   :  { %p117_p7 = pnand %p116_p6, %p110_p3 }
  0x10   :  { %120 = shalt.err (!%p117_p7)
}
  0x11   :  { %s172_s19 = smov 128   ;;  %s173_s20 = smov 8  }
  0x12   :  { %22 = dma.hbm_to_vmem [thread:$0]  %s236_s0, 512, %s17_s10, [#allocation3], %s172_s19, %s172_s19, %s173_s20  }
  0x13   :  { %165 = dma.done.wait [#allocation3], 512  }
  0x14   :  { %166 = vsyncadd [#allocation3], 4294966784  ;;  %v174_v0 = vmov 0.0   ;;  %v32_v1 = vld [vmem:[#allocation2] sm:$0xff]  ;;  %v33_v2 = vld [vmem:[#allocation2 + $0x8] sm:$0xff]  ;;  %s175_s0 = smov [#allocation5]  }
  0x15   :  { %30 = vst [vmem:[#allocation5] sm:$0x1] %v174_v0  ;;  %31 = vst [vmem:[#allocation6] sm:$0x1] %v174_v0  ;;  %v34_v3 = vld [vmem:[#allocation2 + $0x10] sm:$0xff]  ;;  %v35_v4 = vld [vmem:[#allocation2 + $0x18] sm:$0xff]  ;;  %v37_v5 = vadd.f32 %v33_v2, %v32_v1  ;;  %v49_v6 = vmul.f32 %v32_v1, %v32_v1  ;;  %v50_v7 = vmul.f32 %v33_v2, %v33_v2 }
  0x16   :  { %v51_v8 = vmul.f32 %v34_v3, %v34_v3  ;;  %v52_v10 = vmul.f32 %v35_v4, %v35_v4  ;;  %s70_s23 = sshll.u32 %s175_s0, 4  ;;  %s176_s24 = smov [#allocation6]   ;;  %s71_s23 = int_to_ptr.vmem [resolvable:$true] %s70_s23 }
  0x17   :  { %v38_v9 = vadd.f32 %v37_v5, %v34_v3  ;;  %v53_v11 = vadd.f32 %v50_v7, %v49_v6  ;;  %s80_s25 = sshll.u32 %s176_s24, 4  ;;  %s121_s26 = scalar_lea.vmem %s71_s23, 16  ;;  %s204_s25 = int_to_ptr.vmem [resolvable:$true] %s80_s25 }
  0x18   :  { %p122_p8 = scmp.ne.s32.totalorder %s71_s23, %s121_s26  ;;  %s125_s27 = scalar_lea.vmem %s71_s23, 32 }
  0x19   :  { %v39_v12 = vadd.f32 %v38_v9, %v35_v4  ;;  %v54_v13 = vadd.f32 %v53_v11, %v51_v8  ;;  %p126_p9 = scmp.lt.s32.totalorder %s71_s23, %s71_s23  ;;  %p127_p10 = scmp.lt.s32.totalorder %s125_s27, %s121_s26 }
  0x1b   :  { %v40_v14 = vrot.slane %v39_v12, 4  ;;  %v55_v15 = vadd.f32 %v54_v13, %v52_v10  ;;  %p128_p11 = por %p127_p10, %p126_p9 }
  0x1c   :  { %v36_v24 = vld [vmem:[#allocation5] sm:$0x1]  ;;  %v48_v27 = vld [vmem:[#allocation6] sm:$0x1] }
  0x1d   :  { %v41_v16 = vadd.f32 %v40_v14, %v39_v12  ;;  %v56_v17 = vrot.slane %v55_v15, 4  ;;  %p129_p12 = pnand %p128_p11, %p122_p8 }
  0x1f   :  { %v42_v18 = vrot.slane %v41_v16, 2  ;;  %v57_v19 = vadd.f32 %v56_v17, %v55_v15 }
  0x21   :  { %v43_v20 = vadd.f32 %v42_v18, %v41_v16  ;;  %v58_v21 = vrot.slane %v57_v19, 2 }
  0x23   :  { %v44_v22 = vrot.slane %v43_v20, 1  ;;  %v59_v23 = vadd.f32 %v58_v21, %v57_v19 }
  0x25   :  { %v45_v25 = vadd.f32 %v44_v22, %v43_v20  ;;  %v60_v26 = vrot.slane %v59_v23, 1 }
  0x27   :  { %v46_v28 = vadd.f32 %v45_v25, %v36_v24  ;;  %v61_v29 = vadd.f32 %v60_v26, %v59_v23 }
  0x29   :  { %47 = vst [vmem:[#allocation5] sm:$0x1] %v46_v28  ;;  %v62_v30 = vadd.f32 %v61_v29, %v48_v27 }
  0x2a   :  { %132 = shalt.err (!%p129_p12)
}
  0x2b   :  { %s133_s30 = scalar_lea.hbm %s237_s1, 16 }
  0x2c   :  { %p134_p13 = scmp.ne.s32.totalorder %s237_s1, %s133_s30  ;;  %p137_p0 = scmp.lt.u32.totalorder %s133_s30, %s237_s1 }
  0x2e   :  { %p139_p1 = pnand %p137_p0, %p134_p13 }
  0x30   :  { %142 = shalt.err (!%p139_p1)
}
  0x31   :  { %73 = dma.vmem_to_hbm [thread:$0]  %s71_s23, 16, %s237_s1, [#allocation4]   ;;  %63 = vst [vmem:[#allocation6] sm:$0x1] %v62_v30 }
  0x32   :  { %s143_s9 = scalar_lea.vmem %s204_s25, 16  ;;  %s147_s10 = scalar_lea.vmem %s204_s25, 32 }
  0x33   :  { %p144_p2 = scmp.ne.s32.totalorder %s204_s25, %s143_s9  ;;  %p148_p3 = scmp.lt.s32.totalorder %s204_s25, %s204_s25 }
  0x34   :  { %p149_p4 = scmp.lt.s32.totalorder %s147_s10, %s143_s9 }
  0x36   :  { %p150_p5 = por %p149_p4, %p148_p3 }
  0x38   :  { %p151_p6 = pnand %p150_p5, %p144_p2 }
  0x3a   :  { %154 = shalt.err (!%p151_p6)
}
  0x3b   :  { %s155_s13 = scalar_lea.hbm %s238_s2, 16 }
  0x3c   :  { %p156_p7 = scmp.ne.s32.totalorder %s238_s2, %s155_s13  ;;  %p159_p8 = scmp.lt.u32.totalorder %s155_s13, %s238_s2 }
  0x3e   :  { %p161_p9 = pnand %p159_p8, %p156_p7 }
  0x40   :  { %164 = shalt.err (!%p161_p9)
}
  0x41   :  { %83 = dma.vmem_to_hbm [thread:$0]  %s204_s25, 16, %s238_s2, [#allocation7]  }
  0x42   :  { %167 = dma.done.wait [#allocation4], 16  }
  0x43   :  { %168 = vsyncadd [#allocation4], 4294967280 }
  0x44   :  { %169 = dma.done.wait [#allocation7], 16  }
  0x45   :  { %170 = vsyncadd [#allocation7], 4294967280 }
  0x46   :  { %90 = vsyncpa [#allocation3], 1 }
  0x47   :  { %91 = vsyncpa [#allocation4], 1 }
  0x48   :  { %92 = vsyncpa [#allocation7], 1 }

</bundles_post_ra>
